<compile_context>
chip_gen: v6e
topology: v6e:2x2x1
jax: 0.10.0
libtpu: 0.0.40
codegen_flags: <defaults>
</compile_context>

<pallas_src>
import functools

import jax
import jax.numpy as jnp
from jax.experimental import pallas as pl
from jax.experimental.pallas import tpu as pltpu


# ----------------------------- kernel ---------------------------------------


def _coupling_kernel(
    split_a, split_b,
    x_ref, c_ref,
    w1x_ref, w1c_ref, b1_ref,
    w2_ref, b2_ref,
    w3_ref, b3_ref,
    wh_ref, bh_ref,
    out_ref, logdet_ref,
):
    x = x_ref[...]
    c = c_ref[...]
    xa = x[:, :split_a]
    xb = x[:, split_a:]

    # Fused first layer: x-part (block structured) + condition-part.
    h = (
        jnp.dot(x, w1x_ref[...], preferred_element_type=jnp.float32)
        + jnp.dot(c, w1c_ref[...], preferred_element_type=jnp.float32)
        + b1_ref[...]
    )
    h = jnp.maximum(h, 0.0)
    # Hidden layers (block-diagonal fused -> 128-wide matmuls).
    h = jnp.maximum(
        jnp.dot(h, w2_ref[...], preferred_element_type=jnp.float32) + b2_ref[...], 0.0
    )
    h = jnp.maximum(
        jnp.dot(h, w3_ref[...], preferred_element_type=jnp.float32) + b3_ref[...], 0.0
    )
    # Fused heads: [log_Sa | Ta | log_Sb | Tb].
    head = jnp.dot(h, wh_ref[...], preferred_element_type=jnp.float32) + bh_ref[...]

    log_sa = jnp.tanh(head[:, 0:split_b])
    ta = head[:, split_b:2 * split_b]
    log_sb = jnp.tanh(head[:, 2 * split_b:2 * split_b + split_a])
    tb = head[:, 2 * split_b + split_a:]

    # Za = Xa * exp(log_Sb) + Tb ; Zb = Xb * exp(log_Sa) + Ta
    za = xa * jnp.exp(log_sb) + tb
    zb = xb * jnp.exp(log_sa) + ta

    # Single lane-dense store of the full output tile.
    out_ref[...] = jnp.concatenate([za, zb], axis=-1).astype(out_ref.dtype)

    logdet_ref[...] = (
        jnp.sum(log_sa, axis=-1, keepdims=True)
        + jnp.sum(log_sb, axis=-1, keepdims=True)
    )


# ----------------------------- params ----------------------------------------


def _init_linear(key, n_in, n_out, dtype=jnp.float32):
    """Deterministic PyTorch-like Linear init; weight stored as (in, out)."""
    kw, kb = jax.random.split(key)
    bound = 1.0 / jnp.sqrt(jnp.array(n_in, dtype))
    w = jax.random.uniform(kw, (n_in, n_out), dtype, -bound, bound)
    b = jax.random.uniform(kb, (1, n_out), dtype, -bound, bound)
    return w, b


def init_coupling_network_params(key, in_features, hidden_sizes, out_features):
    params = []
    n_in = in_features
    keys = jax.random.split(key, len(hidden_sizes) + 2)
    for i, n_out in enumerate(hidden_sizes):
        params.extend(_init_linear(keys[i], n_in, n_out))
        n_in = n_out
    params.extend(_init_linear(keys[-2], hidden_sizes[-1], out_features))  # logS
    params.extend(_init_linear(keys[-1], hidden_sizes[-1], out_features))  # T
    return params  # [w1, b1, w2, b2, w3, b3, ws, bs, wt, bt]


def make_coupling_params(key, features, conditions, hidden=(64, 64, 64)):
    split_a = features // 2
    split_b = features - split_a
    ka, kb = jax.random.split(key)
    cna = init_coupling_network_params(ka, split_a + conditions, list(hidden), split_b)
    cnb = init_coupling_network_params(kb, split_b + conditions, list(hidden), split_a)
    return cna, cnb


def _block_diag(wa, wb):
    z1 = jnp.zeros((wa.shape[0], wb.shape[1]), wa.dtype)
    z2 = jnp.zeros((wb.shape[0], wa.shape[1]), wa.dtype)
    top = jnp.concatenate([wa, z1], axis=1)
    bot = jnp.concatenate([z2, wb], axis=1)
    return jnp.concatenate([top, bot], axis=0)


def pack_fused_params(cna, cnb, split_a, split_b, conditions, hidden=64):
    """Fuse CNa and CNb into one block-diagonal MLP (plain JAX, done once)."""
    a_w1, a_b1, a_w2, a_b2, a_w3, a_b3, a_ws, a_bs, a_wt, a_bt = cna
    b_w1, b_b1, b_w2, b_b2, b_w3, b_b3, b_ws, b_bs, b_wt, b_bt = cnb
    h = hidden
    features = split_a + split_b

    # First layer: x-part is block structured (xa -> CNa hidden, xb -> CNb hidden).
    w1x = jnp.zeros((features, 2 * h), jnp.float32)
    w1x = w1x.at[:split_a, :h].set(a_w1[:split_a])
    w1x = w1x.at[split_a:, h:].set(b_w1[:split_b])
    w1c = jnp.concatenate([a_w1[split_a:], b_w1[split_b:]], axis=1)  # (cond, 2h)
    b1 = jnp.concatenate([a_b1, b_b1], axis=1)

    w2 = _block_diag(a_w2, b_w2)
    b2 = jnp.concatenate([a_b2, b_b2], axis=1)
    w3 = _block_diag(a_w3, b_w3)
    b3 = jnp.concatenate([a_b3, b_b3], axis=1)

    # Fused heads, column order: [log_Sa (split_b) | Ta (split_b) | log_Sb (split_a) | Tb (split_a)]
    wh = jnp.zeros((2 * h, 2 * features), jnp.float32)
    wh = wh.at[:h, :split_b].set(a_ws)
    wh = wh.at[:h, split_b:2 * split_b].set(a_wt)
    wh = wh.at[h:, 2 * split_b:2 * split_b + split_a].set(b_ws)
    wh = wh.at[h:, 2 * split_b + split_a:].set(b_wt)
    bh = jnp.concatenate([a_bs, a_bt, b_bs, b_bt], axis=1)

    return (w1x, w1c, b1, w2, b2, w3, b3, wh, bh)


# ----------------------------- wrapper ---------------------------------------


def _round_up(v, m):
    return ((v + m - 1) // m) * m


def conditional_two_way_affine_coupling(
    x, condition, cna_params, cnb_params, features, conditions,
    hidden=64, tile_n=1024,
):
    """Forward pass. Returns (output [N, features], logdet [N])."""
    n = x.shape[0]
    split_a = features // 2
    split_b = features - split_a

    packed = pack_fused_params(cna_params, cnb_params, split_a, split_b,
                               conditions, hidden)

    # Batch tiling (sized for v7x's smaller 64 MiB VMEM too: per-tile activation
    # traffic is only ~tile_n * 41 f32, weights ~80 KB).
    tile = min(tile_n, _round_up(n, 8))
    n_pad = _round_up(n, tile)
    if n_pad != n:
        pad = n_pad - n
        x = jnp.pad(x, ((0, pad), (0, 0)))
        condition = jnp.pad(condition, ((0, pad), (0, 0)))

    grid = (n_pad // tile,)

    act_spec = lambda feat: pl.BlockSpec((tile, feat), lambda i: (i, 0))
    const_spec = lambda arr: pl.BlockSpec(arr.shape, lambda i: (0, 0))

    in_specs = [act_spec(features), act_spec(conditions)] + [
        const_spec(p) for p in packed
    ]
    out_specs = (act_spec(features), act_spec(1))

    # Advisory cost estimate for the XLA scheduler.
    h2 = 2 * hidden
    flops = 2 * n_pad * (features * h2 + conditions * h2 + 2 * h2 * h2
                         + h2 * 2 * features)
    weight_bytes = sum(int(p.size) * 4 for p in packed)
    bytes_accessed = 4 * n_pad * (features + conditions + features + 1) + weight_bytes
    cost = pl.CostEstimate(
        flops=int(flops),
        transcendentals=int(2 * n_pad * features),  # tanh + exp
        bytes_accessed=int(bytes_accessed),
    )

    out, logdet = pl.pallas_call(
        functools.partial(_coupling_kernel, split_a, split_b),
        out_shape=(
            jax.ShapeDtypeStruct((n_pad, features), x.dtype),
            jax.ShapeDtypeStruct((n_pad, 1), jnp.float32),
        ),
        grid=grid,
        in_specs=in_specs,
        out_specs=out_specs,
        compiler_params=pltpu.CompilerParams(
            dimension_semantics=("parallel",),
        ),
        cost_estimate=cost,
    )(x, condition, *packed)

    return out[:n], logdet[:n, 0]


# ----------------------------- reference (pure JAX) ---------------------------


def _reference_forward(x, cond, cna, cnb, split_a):
    hp = jax.lax.Precision.HIGHEST

    def net(h, p):
        w1, b1, w2, b2, w3, b3, ws, bs, wt, bt = p
        h = jnp.maximum(jnp.dot(h, w1, precision=hp) + b1, 0.0)
        h = jnp.maximum(jnp.dot(h, w2, precision=hp) + b2, 0.0)
        h = jnp.maximum(jnp.dot(h, w3, precision=hp) + b3, 0.0)
        return jnp.tanh(jnp.dot(h, ws, precision=hp) + bs), jnp.dot(h, wt, precision=hp) + bt

    xa, xb = x[:, :split_a], x[:, split_a:]
    log_sa, ta = net(jnp.concatenate([xa, cond], axis=1), cna)
    log_sb, tb = net(jnp.concatenate([xb, cond], axis=1), cnb)
    za = xa * jnp.exp(log_sb) + tb
    zb = xb * jnp.exp(log_sa) + ta
    return jnp.concatenate([za, zb], axis=1), log_sa.sum(-1) + log_sb.sum(-1)


# ----------------------------- main ------------------------------------------


if __name__ == "__main__":
    batch = 8
    features = 16
    conditions = 8

    key = jax.random.PRNGKey(0)
    k_x, k_c, k_p = jax.random.split(key, 3)

    x = jax.random.normal(k_x, (batch, features), jnp.float32)
    cond = jax.random.normal(k_c, (batch, conditions), jnp.float32)

    cna_params, cnb_params = make_coupling_params(k_p, features, conditions)

    out, logdet = conditional_two_way_affine_coupling(
        x, cond, cna_params, cnb_params, features, conditions
    )
    out = jax.block_until_ready(out)
    logdet = jax.block_until_ready(logdet)

    assert out.shape == (batch, features)
    assert logdet.shape == (batch,)
    assert bool(jnp.all(jnp.isfinite(out))) and bool(jnp.all(jnp.isfinite(logdet)))

    ref_out, ref_logdet = _reference_forward(x, cond, cna_params, cnb_params,
                                             features // 2)
    assert bool(jnp.allclose(out, ref_out, rtol=1e-3, atol=1e-3))
    assert bool(jnp.allclose(logdet, ref_logdet, rtol=1e-3, atol=1e-3))

    print("KERNEL_OK")
</pallas_src>

<mosaic_0001>
module attributes {stable_mosaic.version = 11 : i64} {
  func.func @_coupling_kernel(%arg0: i32, %arg1: memref<8x16xf32, #tpu.memory_space<vmem>>, %arg2: memref<8x8xf32, #tpu.memory_space<vmem>>, %arg3: memref<16x128xf32, #tpu.memory_space<vmem>>, %arg4: memref<8x128xf32, #tpu.memory_space<vmem>>, %arg5: memref<1x128xf32, #tpu.memory_space<vmem>>, %arg6: memref<128x128xf32, #tpu.memory_space<vmem>>, %arg7: memref<1x128xf32, #tpu.memory_space<vmem>>, %arg8: memref<128x128xf32, #tpu.memory_space<vmem>>, %arg9: memref<1x128xf32, #tpu.memory_space<vmem>>, %arg10: memref<128x32xf32, #tpu.memory_space<vmem>>, %arg11: memref<1x32xf32, #tpu.memory_space<vmem>>, %arg12: memref<8x16xf32, #tpu.memory_space<vmem>>, %arg13: memref<8x1xf32, #tpu.memory_space<vmem>>) attributes {dimension_semantics = [#tpu.dimension_semantics<parallel>], iteration_bounds = array<i64: 1>, scalar_prefetch = 0 : i64, scratch_operands = 0 : i64, tpu.core_type = #tpu.core_type<tc>, window_params = [{transform_indices = @transform_0, window_bounds = array<i64: 8, 16>}, {transform_indices = @transform_1, window_bounds = array<i64: 8, 8>}, {pipeline_mode = #tpu.pipeline_mode<synchronous>, transform_indices = @transform_2, window_bounds = array<i64: 16, 128>}, {pipeline_mode = #tpu.pipeline_mode<synchronous>, transform_indices = @transform_3, window_bounds = array<i64: 8, 128>}, {pipeline_mode = #tpu.pipeline_mode<synchronous>, transform_indices = @transform_4, window_bounds = array<i64: 1, 128>}, {pipeline_mode = #tpu.pipeline_mode<synchronous>, transform_indices = @transform_5, window_bounds = array<i64: 128, 128>}, {pipeline_mode = #tpu.pipeline_mode<synchronous>, transform_indices = @transform_6, window_bounds = array<i64: 1, 128>}, {pipeline_mode = #tpu.pipeline_mode<synchronous>, transform_indices = @transform_7, window_bounds = array<i64: 128, 128>}, {pipeline_mode = #tpu.pipeline_mode<synchronous>, transform_indices = @transform_8, window_bounds = array<i64: 1, 128>}, {pipeline_mode = #tpu.pipeline_mode<synchronous>, transform_indices = @transform_9, window_bounds = array<i64: 128, 32>}, {pipeline_mode = #tpu.pipeline_mode<synchronous>, transform_indices = @transform_10, window_bounds = array<i64: 1, 32>}, {transform_indices = @transform_11, window_bounds = array<i64: 8, 16>}, {transform_indices = @transform_12, window_bounds = array<i64: 8, 1>}]} {
    %c0 = arith.constant 0 : index
    %c0_0 = arith.constant 0 : index
    %0 = vector.load %arg1[%c0, %c0_0] : memref<8x16xf32, #tpu.memory_space<vmem>>, vector<8x16xf32>
    %c0_1 = arith.constant 0 : index
    %c0_2 = arith.constant 0 : index
    %1 = vector.load %arg2[%c0_1, %c0_2] : memref<8x8xf32, #tpu.memory_space<vmem>>, vector<8x8xf32>
    %2 = vector.extract_strided_slice %0 {offsets = [0, 0], sizes = [8, 8], strides = [1, 1]} : vector<8x16xf32> to vector<8x8xf32>
    %3 = vector.extract_strided_slice %0 {offsets = [0, 8], sizes = [8, 8], strides = [1, 1]} : vector<8x16xf32> to vector<8x8xf32>
    %c0_3 = arith.constant 0 : index
    %c0_4 = arith.constant 0 : index
    %4 = vector.load %arg3[%c0_3, %c0_4] : memref<16x128xf32, #tpu.memory_space<vmem>>, vector<16x128xf32>
    %cst = arith.constant dense<0.000000e+00> : vector<8x128xf32>
    %5 = tpu.matmul %0, %4, %cst {dimension_numbers = #tpu.dot_dimension_numbers<[1], [0], [0], [1], [0, 0, 1, 1], [], []>} : vector<8x16xf32>, vector<16x128xf32>, vector<8x128xf32> -> vector<8x128xf32>
    %c0_5 = arith.constant 0 : index
    %c0_6 = arith.constant 0 : index
    %6 = vector.load %arg4[%c0_5, %c0_6] : memref<8x128xf32, #tpu.memory_space<vmem>>, vector<8x128xf32>
    %cst_7 = arith.constant dense<0.000000e+00> : vector<8x128xf32>
    %7 = tpu.matmul %1, %6, %cst_7 {dimension_numbers = #tpu.dot_dimension_numbers<[1], [0], [0], [1], [0, 0, 1, 1], [], []>} : vector<8x8xf32>, vector<8x128xf32>, vector<8x128xf32> -> vector<8x128xf32>
    %8 = arith.addf %5, %7 : vector<8x128xf32>
    %c0_8 = arith.constant 0 : index
    %c0_9 = arith.constant 0 : index
    %9 = vector.load %arg5[%c0_8, %c0_9] : memref<1x128xf32, #tpu.memory_space<vmem>>, vector<1x128xf32>
    %10 = vector.broadcast %9 : vector<1x128xf32> to vector<8x128xf32>
    %11 = arith.addf %8, %10 : vector<8x128xf32>
    %cst_10 = arith.constant 0.000000e+00 : f32
    %12 = vector.broadcast %cst_10 : f32 to vector<8x128xf32>
    %13 = arith.maximumf %11, %12 : vector<8x128xf32>
    %c0_11 = arith.constant 0 : index
    %c0_12 = arith.constant 0 : index
    %14 = vector.load %arg6[%c0_11, %c0_12] : memref<128x128xf32, #tpu.memory_space<vmem>>, vector<128x128xf32>
    %cst_13 = arith.constant dense<0.000000e+00> : vector<8x128xf32>
    %15 = tpu.matmul %13, %14, %cst_13 {dimension_numbers = #tpu.dot_dimension_numbers<[1], [0], [0], [1], [0, 0, 1, 1], [], []>} : vector<8x128xf32>, vector<128x128xf32>, vector<8x128xf32> -> vector<8x128xf32>
    %c0_14 = arith.constant 0 : index
    %c0_15 = arith.constant 0 : index
    %16 = vector.load %arg7[%c0_14, %c0_15] : memref<1x128xf32, #tpu.memory_space<vmem>>, vector<1x128xf32>
    %17 = vector.broadcast %16 : vector<1x128xf32> to vector<8x128xf32>
    %18 = arith.addf %15, %17 : vector<8x128xf32>
    %cst_16 = arith.constant 0.000000e+00 : f32
    %19 = vector.broadcast %cst_16 : f32 to vector<8x128xf32>
    %20 = arith.maximumf %18, %19 : vector<8x128xf32>
    %c0_17 = arith.constant 0 : index
    %c0_18 = arith.constant 0 : index
    %21 = vector.load %arg8[%c0_17, %c0_18] : memref<128x128xf32, #tpu.memory_space<vmem>>, vector<128x128xf32>
    %cst_19 = arith.constant dense<0.000000e+00> : vector<8x128xf32>
    %22 = tpu.matmul %20, %21, %cst_19 {dimension_numbers = #tpu.dot_dimension_numbers<[1], [0], [0], [1], [0, 0, 1, 1], [], []>} : vector<8x128xf32>, vector<128x128xf32>, vector<8x128xf32> -> vector<8x128xf32>
    %c0_20 = arith.constant 0 : index
    %c0_21 = arith.constant 0 : index
    %23 = vector.load %arg9[%c0_20, %c0_21] : memref<1x128xf32, #tpu.memory_space<vmem>>, vector<1x128xf32>
    %24 = vector.broadcast %23 : vector<1x128xf32> to vector<8x128xf32>
    %25 = arith.addf %22, %24 : vector<8x128xf32>
    %cst_22 = arith.constant 0.000000e+00 : f32
    %26 = vector.broadcast %cst_22 : f32 to vector<8x128xf32>
    %27 = arith.maximumf %25, %26 : vector<8x128xf32>
    %c0_23 = arith.constant 0 : index
    %c0_24 = arith.constant 0 : index
    %28 = vector.load %arg10[%c0_23, %c0_24] : memref<128x32xf32, #tpu.memory_space<vmem>>, vector<128x32xf32>
    %cst_25 = arith.constant dense<0.000000e+00> : vector<8x32xf32>
    %29 = tpu.matmul %27, %28, %cst_25 {dimension_numbers = #tpu.dot_dimension_numbers<[1], [0], [0], [1], [0, 0, 1, 1], [], []>} : vector<8x128xf32>, vector<128x32xf32>, vector<8x32xf32> -> vector<8x32xf32>
    %c0_26 = arith.constant 0 : index
    %c0_27 = arith.constant 0 : index
    %30 = vector.load %arg11[%c0_26, %c0_27] : memref<1x32xf32, #tpu.memory_space<vmem>>, vector<1x32xf32>
    %31 = vector.broadcast %30 : vector<1x32xf32> to vector<8x32xf32>
    %32 = arith.addf %29, %31 : vector<8x32xf32>
    %33 = vector.extract_strided_slice %32 {offsets = [0, 0], sizes = [8, 8], strides = [1, 1]} : vector<8x32xf32> to vector<8x8xf32>
    %34 = math.tanh %33 : vector<8x8xf32>
    %35 = vector.extract_strided_slice %32 {offsets = [0, 8], sizes = [8, 8], strides = [1, 1]} : vector<8x32xf32> to vector<8x8xf32>
    %36 = vector.extract_strided_slice %32 {offsets = [0, 16], sizes = [8, 8], strides = [1, 1]} : vector<8x32xf32> to vector<8x8xf32>
    %37 = math.tanh %36 : vector<8x8xf32>
    %38 = vector.extract_strided_slice %32 {offsets = [0, 24], sizes = [8, 8], strides = [1, 1]} : vector<8x32xf32> to vector<8x8xf32>
    %39 = math.exp %37 : vector<8x8xf32>
    %40 = arith.mulf %2, %39 : vector<8x8xf32>
    %41 = arith.addf %40, %38 : vector<8x8xf32>
    %42 = math.exp %34 : vector<8x8xf32>
    %43 = arith.mulf %3, %42 : vector<8x8xf32>
    %44 = arith.addf %43, %35 : vector<8x8xf32>
    %45 = tpu.concatenate %41, %44 in 1 : vector<8x8xf32>, vector<8x8xf32> -> vector<8x16xf32>
    %c0_28 = arith.constant 0 : index
    %c0_29 = arith.constant 0 : index
    %46 = vector.load %arg12[%c0_28, %c0_29] : memref<8x16xf32, #tpu.memory_space<vmem>>, vector<8x16xf32>
    tpu.vector_store %arg12[%c0_28, %c0_29], %45 {strides = array<i32>} : memref<8x16xf32, #tpu.memory_space<vmem>>, vector<8x16xf32>,
    %cst_30 = arith.constant dense<0.000000e+00> : vector<8xf32>
    %47 = vector.multi_reduction <add>, %34, %cst_30 [1] : vector<8x8xf32> to vector<8xf32>
    %48 = vector.shape_cast %47 : vector<8xf32> to vector<8x1xf32>
    %cst_31 = arith.constant dense<0.000000e+00> : vector<8xf32>
    %49 = vector.multi_reduction <add>, %37, %cst_31 [1] : vector<8x8xf32> to vector<8xf32>
    %50 = vector.shape_cast %49 : vector<8xf32> to vector<8x1xf32>
    %51 = arith.addf %48, %50 : vector<8x1xf32>
    %c0_32 = arith.constant 0 : index
    %c0_33 = arith.constant 0 : index
    %52 = vector.load %arg13[%c0_32, %c0_33] : memref<8x1xf32, #tpu.memory_space<vmem>>, vector<8x1xf32>
    tpu.vector_store %arg13[%c0_32, %c0_33], %51 {strides = array<i32>} : memref<8x1xf32, #tpu.memory_space<vmem>>, vector<8x1xf32>,
    return
  }
  func.func @transform_0(%arg0: i32) -> (i32, i32) {
    %c0_i32 = arith.constant 0 : i32
    %c0_i32_0 = arith.constant 0 : i32
    return %arg0, %c0_i32 : i32, i32
  }
  func.func @transform_1(%arg0: i32) -> (i32, i32) {
    %c0_i32 = arith.constant 0 : i32
    %c0_i32_0 = arith.constant 0 : i32
    return %arg0, %c0_i32 : i32, i32
  }
  func.func @transform_2(%arg0: i32) -> (i32, i32) {
    %c0_i32 = arith.constant 0 : i32
    %c0_i32_0 = arith.constant 0 : i32
    %c0_i32_1 = arith.constant 0 : i32
    return %c0_i32, %c0_i32_0 : i32, i32
  }
  func.func @transform_3(%arg0: i32) -> (i32, i32) {
    %c0_i32 = arith.constant 0 : i32
    %c0_i32_0 = arith.constant 0 : i32
    %c0_i32_1 = arith.constant 0 : i32
    return %c0_i32, %c0_i32_0 : i32, i32
  }
  func.func @transform_4(%arg0: i32) -> (i32, i32) {
    %c0_i32 = arith.constant 0 : i32
    %c0_i32_0 = arith.constant 0 : i32
    %c0_i32_1 = arith.constant 0 : i32
    return %c0_i32, %c0_i32_0 : i32, i32
  }
  func.func @transform_5(%arg0: i32) -> (i32, i32) {
    %c0_i32 = arith.constant 0 : i32
    %c0_i32_0 = arith.constant 0 : i32
    %c0_i32_1 = arith.constant 0 : i32
    return %c0_i32, %c0_i32_0 : i32, i32
  }
  func.func @transform_6(%arg0: i32) -> (i32, i32) {
    %c0_i32 = arith.constant 0 : i32
    %c0_i32_0 = arith.constant 0 : i32
    %c0_i32_1 = arith.constant 0 : i32
    return %c0_i32, %c0_i32_0 : i32, i32
  }
  func.func @transform_7(%arg0: i32) -> (i32, i32) {
    %c0_i32 = arith.constant 0 : i32
    %c0_i32_0 = arith.constant 0 : i32
    %c0_i32_1 = arith.constant 0 : i32
    return %c0_i32, %c0_i32_0 : i32, i32
  }
  func.func @transform_8(%arg0: i32) -> (i32, i32) {
    %c0_i32 = arith.constant 0 : i32
    %c0_i32_0 = arith.constant 0 : i32
    %c0_i32_1 = arith.constant 0 : i32
    return %c0_i32, %c0_i32_0 : i32, i32
  }
  func.func @transform_9(%arg0: i32) -> (i32, i32) {
    %c0_i32 = arith.constant 0 : i32
    %c0_i32_0 = arith.constant 0 : i32
    %c0_i32_1 = arith.constant 0 : i32
    return %c0_i32, %c0_i32_0 : i32, i32
  }
  func.func @transform_10(%arg0: i32) -> (i32, i32) {
    %c0_i32 = arith.constant 0 : i32
    %c0_i32_0 = arith.constant 0 : i32
    %c0_i32_1 = arith.constant 0 : i32
    return %c0_i32, %c0_i32_0 : i32, i32
  }
  func.func @transform_11(%arg0: i32) -> (i32, i32) {
    %c0_i32 = arith.constant 0 : i32
    %c0_i32_0 = arith.constant 0 : i32
    return %arg0, %c0_i32 : i32, i32
  }
  func.func @transform_12(%arg0: i32) -> (i32, i32) {
    %c0_i32 = arith.constant 0 : i32
    %c0_i32_0 = arith.constant 0 : i32
    return %arg0, %c0_i32 : i32, i32
  }
}

</mosaic_0001>

<bundles_post_ra>
// kernel: tpu_custom_call.1
= control target key start
LH: loop header
LB: loop body
LE: loop exit
PB: predicated region body
PF: predicated region fallthrough
CT: control target
= control target key end

     0   :  { %18 = vsyncpa [#allocation3], 0  ;;  %s1064_s0 = inlined_call_operand.vmem [shape: f32[8,16], index: 0, kind: input, shape index: {}]   ;;  %s1065_s1 = inlined_call_operand.vmem [shape: f32[8,8], index: 1, kind: input, shape index: {}]   ;;  %s1066_s2 = inlined_call_operand.vmem [shape: f32[16,128], index: 2, kind: input, shape index: {}]   ;;  %s1067_s3 = inlined_call_operand.vmem [shape: f32[8,128], index: 3, kind: input, shape index: {}]   ;;  %s1068_s4 = inlined_call_operand.vmem [shape: f32[1,128], index: 4, kind: input, shape index: {}]   ;;  %s1069_s5 = inlined_call_operand.vmem [shape: f32[128,128], index: 5, kind: input, shape index: {}]   ;;  %s1070_s6 = inlined_call_operand.vmem [shape: f32[1,128], index: 6, kind: input, shape index: {}]   ;;  %s1071_s7 = inlined_call_operand.hbm [shape: f32[128,128], index: 7, kind: input, shape index: {}]   ;;  %s1072_s8 = inlined_call_operand.vmem [shape: f32[1,128], index: 8, kind: input, shape index: {}]   ;;  %s1073_s9 = inlined_call_operand.vmem [shape: f32[128,32], index: 9, kind: input, shape index: {}]   ;;  %s1074_s10 = inlined_call_operand.vmem [shape: f32[1,32], index: 10, kind: input, shape index: {}]   ;;  %s1075_s11 = inlined_call_operand.hbm [shape: f32[8,16], index: 11, kind: output, shape index: {0}]   ;;  %s1076_s12 = inlined_call_operand.vmem [shape: f32[8,1], index: 12, kind: output, shape index: {1}]  }
   0x1   :  { %19 = vsyncpa [#allocation4], 0  ;;  %s785_s21 = smov [#allocation2]  }
   0x2   :  { %s39_s22 = sshll.u32 %s785_s21, 4  ;;  %s40_s22 = int_to_ptr.vmem [resolvable:$true] %s39_s22 }
   0x3   :  { %s749_s23 = scalar_lea.vmem %s40_s22, 2048  ;;  %p754_p1 = scmp.lt.s32.totalorder %s40_s22, %s40_s22 }
   0x4   :  { %p750_p0 = scmp.ne.s32.totalorder %s40_s22, %s749_s23  ;;  %p755_p2 = scmp.lt.s32.totalorder %s749_s23, %s749_s23 }
   0x6   :  { %p756_p3 = por %p755_p2, %p754_p1 }
   0x8   :  { %p757_p4 = pnand %p756_p3, %p750_p0 }
   0xa   :  { %760 = shalt.err (!%p757_p4)
}
   0xb   :  { %s786_s24 = smov 128   ;;  %s787_s25 = smov 8  }
   0xc   :  { %45 = dma.hbm_to_vmem [thread:$0]  %s1071_s7, 2048, %s40_s22, [#allocation3], %s786_s24, %s786_s24, %s787_s25  }
   0xd   :  { %781 = dma.done.wait [#allocation3], 2048  }
   0xe   :  { %782 = vsyncadd [#allocation3], 4294965248  ;;  %v788_v0 = vmov 0.0   ;;  %vm789_vm0 = vmmov 0   ;;  %vm60_vm1 = vcmask 64512   ;;  %v59_v1 = vld [vmem:[%s1067_s3] sm:$0xff] }
   0xf   :  { %612 = vmatprep.subr.mxu1 %v788_v0  ;;  %614 = vmatprep.mubr.msk.f32.mxu1 %vm789_vm0, %v788_v0  ;;  %v56_v2 = vld [vmem:[%s1065_s1] sm:$0xff]  ;;  %v58_v3 = vld [vmem:[%s1066_s2 + $0x8] sm:$0xff]  ;;  %v232_v4 = vld [vmem:[%s1069_s5 + $0x78] sm:$0xff]  ;;  %vm134_vm2 = vcmask 130048   ;;  %vm529_vm3 = vcmask 7168   ;;  %s792_s3 = smov [#allocation5]  }
  0x10   :  { %624 = vmatprep.subr.mxu0 %v788_v0  ;;  %656 = vmatprep.mubr.msk.f32.mxu0 %vm789_vm0, %v788_v0  ;;  %v57_v5 = vld [vmem:[%s1066_s2] sm:$0xff]  ;;  %v231_v7 = vld [vmem:[%s1069_s5 + $0x70] sm:$0xff]  ;;  %v230_v8 = vld [vmem:[%s1069_s5 + $0x68] sm:$0xff]  ;;  %s537_s19 = sshll.u32 %s792_s3, 4  ;;  %s538_s19 = int_to_ptr.vmem [resolvable:$true] %s537_s19 }
  0x11   :  { %613 = vmatpush3.msra.mxu1 %v59_v1  ;;  %v890_v6 = vld [vmem:[%s1064_s0] sm:$0xff]  ;;  %625 = vmatpush3.msra.mxu0 %v232_v4  ;;  %v228_v10 = vld [vmem:[%s1069_s5 + $0x58] sm:$0xff]  ;;  %v227_v11 = vld [vmem:[%s1069_s5 + $0x50] sm:$0xff]  ;;  %s761_s20 = scalar_lea.vmem %s538_s19, 128  ;;  %p766_p6 = scmp.lt.s32.totalorder %s538_s19, %s538_s19 }
  0x12   :  { %615 = vmatmul.mubr.msk.f32.vlgmr.msra.gmra.mxu1 %vm60_vm1, %v56_v2  ;;  %617 = vmatprep.subr.mxu1 %v788_v0  ;;  %v229_v9 = vld [vmem:[%s1069_s5 + $0x60] sm:$0xff]  ;;  %v226_v12 = vld [vmem:[%s1069_s5 + $0x48] sm:$0xff]  ;;  %v224_v14 = vld [vmem:[%s1069_s5 + $0x38] sm:$0xff]  ;;  %p762_p5 = scmp.ne.s32.totalorder %s538_s19, %s761_s20  ;;  %p767_p7 = scmp.lt.s32.totalorder %s761_s20, %s761_s20 }
  0x13   :  { %618 = vmatpush3.msra.mxu1 %v58_v3  ;;  %621 = vmatprep.mubr.msk.f32.mxu1 %vm789_vm0, %v788_v0  ;;  %v225_v13 = vld [vmem:[%s1069_s5 + $0x40] sm:$0xff]  ;;  %v223_v15 = vld [vmem:[%s1069_s5 + $0x30] sm:$0xff]  ;;  %v222_v16 = vld [vmem:[%s1069_s5 + $0x28] sm:$0xff] }
  0x14   :  { %619 = vmatprep.subr.mxu1 %v788_v0  ;;  %626 = vmatprep.subr.mxu0 %v788_v0  ;;  %v221_v17 = vld [vmem:[%s1069_s5 + $0x20] sm:$0xff]  ;;  %v220_v18 = vld [vmem:[%s1069_s5 + $0x18] sm:$0xff]  ;;  %v219_v19 = vld [vmem:[%s1069_s5 + $0x10] sm:$0xff]  ;;  %p768_p8 = por %p767_p7, %p766_p6 }
  0x15   :  { %620 = vmatpush3.msra.mxu1 %v57_v5  ;;  %627 = vmatpush3.msra.mxu0 %v231_v7  ;;  %v218_v20 = vld [vmem:[%s1069_s5 + $0x8] sm:$0xff]  ;;  %v217_v21 = vld [vmem:[%s1069_s5] sm:$0xff]  ;;  %v326_v22 = vld [vmem:[#allocation2 + $0x78] sm:$0xff] }
  0x16   :  { %622 = vmatmul.mubr.msk.f32.vlgmr.msra.gmra.mxu1 %vm134_vm2, %v890_v6  ;;  %628 = vmatprep.subr.mxu0 %v788_v0  ;;  %v325_v23 = vld [vmem:[#allocation2 + $0x70] sm:$0xff]  ;;  %v324_v24 = vld [vmem:[#allocation2 + $0x68] sm:$0xff]  ;;  %v323_v25 = vld [vmem:[#allocation2 + $0x60] sm:$0xff]  ;;  %p769_p9 = pnand %p768_p8, %p762_p5 }
  0x17   :  { %659 = vmatprep.subr.mxu1 %v788_v0  ;;  %629 = vmatpush3.msra.mxu0 %v230_v8  ;;  %v322_v26 = vld [vmem:[#allocation2 + $0x58] sm:$0xff]  ;;  %v321_v27 = vld [vmem:[#allocation2 + $0x50] sm:$0xff]  ;;  %v320_v28 = vld [vmem:[#allocation2 + $0x48] sm:$0xff] }
  0x18   :  { %691 = vmatprep.mubr.msk.f32.mxu1 %vm789_vm0, %v788_v0  ;;  %630 = vmatprep.subr.mxu0 %v788_v0  ;;  %v319_v29 = vld [vmem:[#allocation2 + $0x40] sm:$0xff]  ;;  %v318_v30 = vld [vmem:[#allocation2 + $0x38] sm:$0xff]  ;;  %v317_v31 = vld [vmem:[#allocation2 + $0x30] sm:$0xff] }
  0x19   :  { %631 = vmatpush3.msra.mxu0 %v229_v9  ;;  %660 = vmatpush3.msra.mxu1 %v326_v22  ;;  %v316_v32 = vld [vmem:[#allocation2 + $0x28] sm:$0xff]  ;;  %v315_v33 = vld [vmem:[#allocation2 + $0x20] sm:$0xff]  ;;  %v314_v34 = vld [vmem:[#allocation2 + $0x18] sm:$0xff] }
  0x1a   :  { %632 = vmatprep.subr.mxu0 %v788_v0  ;;  %661 = vmatprep.subr.mxu1 %v788_v0  ;;  %v552_v38 = vld [vmem:[%s1068_s4] ss:$0 sm:$0xff]  ;;  %v313_v43 = vld [vmem:[#allocation2 + $0x10] sm:$0xff]  ;;  %v312_v44 = vld [vmem:[#allocation2 + $0x8] sm:$0xff] }
  0x1b   :  { %633 = vmatpush3.msra.mxu0 %v228_v10  ;;  %662 = vmatpush3.msra.mxu1 %v325_v23  ;;  %v311_v45 = vld [vmem:[#allocation2] sm:$0xff]  ;;  %v420_v46 = vld [vmem:[%s1073_s9 + $0x78] sm:$0xff]  ;;  %v419_v47 = vld [vmem:[%s1073_s9 + $0x70] sm:$0xff] }
  0x1c   :  { %634 = vmatprep.subr.mxu0 %v788_v0  ;;  %663 = vmatprep.subr.mxu1 %v788_v0  ;;  %v418_v48 = vld [vmem:[%s1073_s9 + $0x68] sm:$0xff]  ;;  %v417_v49 = vld [vmem:[%s1073_s9 + $0x60] sm:$0xff]  ;;  %v416_v50 = vld [vmem:[%s1073_s9 + $0x58] sm:$0xff] }
  0x1d   :  { %635 = vmatpush3.msra.mxu0 %v227_v11  ;;  %664 = vmatpush3.msra.mxu1 %v324_v24  ;;  %v415_v51 = vld [vmem:[%s1073_s9 + $0x50] sm:$0xff]  ;;  %v414_v52 = vld [vmem:[%s1073_s9 + $0x48] sm:$0xff]  ;;  %v413_v53 = vld [vmem:[%s1073_s9 + $0x40] sm:$0xff] }
  0x1e   :  { %636 = vmatprep.subr.mxu0 %v788_v0  ;;  %665 = vmatprep.subr.mxu1 %v788_v0  ;;  %v412_v54 = vld [vmem:[%s1073_s9 + $0x38] sm:$0xff]  ;;  %v411_v55 = vld [vmem:[%s1073_s9 + $0x30] sm:$0xff]  ;;  %v410_v56 = vld [vmem:[%s1073_s9 + $0x28] sm:$0xff] }
  0x1f   :  { %637 = vmatpush3.msra.mxu0 %v226_v12  ;;  %666 = vmatpush3.msra.mxu1 %v323_v25  ;;  %v409_v57 = vld [vmem:[%s1073_s9 + $0x20] sm:$0xff]  ;;  %v408_v58 = vld [vmem:[%s1073_s9 + $0x18] sm:$0xff]  ;;  %v407_v1 = vld [vmem:[%s1073_s9 + $0x10] sm:$0xff] }
  0x20   :  { %638 = vmatprep.subr.mxu0 %v788_v0  ;;  %667 = vmatprep.subr.mxu1 %v788_v0  ;;  %v553_v59 = vld [vmem:[%s1070_s6] ss:$0 sm:$0xff]  ;;  %v406_v2 = vld [vmem:[%s1073_s9 + $0x8] sm:$0xff] }
  0x21   :  { %639 = vmatpush3.msra.mxu0 %v225_v13  ;;  %668 = vmatpush3.msra.mxu1 %v322_v26  ;;  %v405_v3 = vld [vmem:[%s1073_s9] sm:$0xff]  ;;  %s790_s9 = smov 112  }
  0x22   :  { %640 = vmatprep.subr.mxu0 %v788_v0  ;;  %669 = vmatprep.subr.mxu1 %v788_v0  ;;  %v554_v4 = vld [vmem:[%s1072_s8] ss:$0 sm:$0xff]  ;;  %s791_s8 = smov 104  }
  0x23   :  { %641 = vmatpush3.msra.mxu0 %v224_v14  ;;  %670 = vmatpush3.msra.mxu1 %v321_v27  ;;  %v555_v10 = vld [vmem:[%s1074_s10] ss:$0 sm:$0xff] }
  0x24   :  { %642 = vmatprep.subr.mxu0 %v788_v0  ;;  %671 = vmatprep.subr.mxu1 %v788_v0 }
  0x25   :  { %643 = vmatpush3.msra.mxu0 %v223_v15  ;;  %672 = vmatpush3.msra.mxu1 %v320_v28 }
  0x26   :  { %644 = vmatprep.subr.mxu0 %v788_v0  ;;  %673 = vmatprep.subr.mxu1 %v788_v0 }
  0x27   :  { %645 = vmatpush3.msra.mxu0 %v222_v16  ;;  %674 = vmatpush3.msra.mxu1 %v319_v29 }
  0x28   :  { %646 = vmatprep.subr.mxu0 %v788_v0  ;;  %675 = vmatprep.subr.mxu1 %v788_v0 }
  0x29   :  { %647 = vmatpush3.msra.mxu0 %v221_v17  ;;  %676 = vmatpush3.msra.mxu1 %v318_v30 }
  0x2a   :  { %648 = vmatprep.subr.mxu0 %v788_v0  ;;  %677 = vmatprep.subr.mxu1 %v788_v0 }
  0x2b   :  { %649 = vmatpush3.msra.mxu0 %v220_v18  ;;  %678 = vmatpush3.msra.mxu1 %v317_v31 }
  0x2c   :  { %650 = vmatprep.subr.mxu0 %v788_v0  ;;  %679 = vmatprep.subr.mxu1 %v788_v0 }
  0x2d   :  { %651 = vmatpush3.msra.mxu0 %v219_v19  ;;  %680 = vmatpush3.msra.mxu1 %v316_v32 }
  0x2e   :  { %652 = vmatprep.subr.mxu0 %v788_v0  ;;  %681 = vmatprep.subr.mxu1 %v788_v0 }
  0x2f   :  { %653 = vmatpush3.msra.mxu0 %v218_v20  ;;  %682 = vmatpush3.msra.mxu1 %v315_v33 }
  0x30   :  { %654 = vmatprep.subr.mxu0 %v788_v0  ;;  %683 = vmatprep.subr.mxu1 %v788_v0 }
  0x31   :  { %655 = vmatpush3.msra.mxu0 %v217_v21  ;;  %684 = vmatpush3.msra.mxu1 %v314_v34 }
  0x32   :  { %694 = vmatprep.subr.mxu0 %v788_v0  ;;  %685 = vmatprep.subr.mxu1 %v788_v0 }
  0x33   :  { %686 = vmatpush3.msra.mxu1 %v313_v43 }
  0x34   :  { %687 = vmatprep.subr.mxu1 %v788_v0 }
  0x35   :  { %688 = vmatpush3.msra.mxu1 %v312_v44 }
  0x36   :  { %689 = vmatprep.subr.mxu1 %v788_v0 }
  0x37   :  { %690 = vmatpush3.msra.mxu1 %v311_v45 }
  0xd2   :  { %v130_v35 = vpop.f32.mrf.mxu1 }
  0xd4   :  { %v616_v36 = vpop.f32.mrf.mxu1 }
  0xd6   :  { %v204_v37 = vpop.f32.mrf.mxu1 }
  0xd7   :  { %v205_v39 = vadd.f32 %v204_v37, %v130_v35 }
  0xd8   :  { %v623_v40 = vpop.f32.mrf.mxu1 }
  0xd9   :  { %v215_v41 = vadd.f32 %v552_v38, %v205_v39 }
  0xdb   :  { %v216_v42 = vmax.f32 %v215_v41, 0.0 }
  0xdd   :  { %657 = vmatmul.mubr.f32.vlgmr.msra.gmra.mxu0 %v216_v42 }
  0xde   :  { %726 = vmatprep.mubr.msk.f32.mxu0 %vm789_vm0, %v788_v0  ;;  %695 = vmatpush3.msra.mxu0 %v420_v46 }
  0xdf   :  { %696 = vmatprep.subr.mxu0 %v788_v0 }
  0xe0   :  { %697 = vmatpush3.msra.mxu0 %v419_v47 }
  0xe1   :  { %698 = vmatprep.subr.mxu0 %v788_v0 }
  0xe2   :  { %699 = vmatpush3.msra.mxu0 %v418_v48 }
  0xe3   :  { %700 = vmatprep.subr.mxu0 %v788_v0 }
  0xe4   :  { %701 = vmatpush3.msra.mxu0 %v417_v49 }
  0xe5   :  { %702 = vmatprep.subr.mxu0 %v788_v0 }
  0xe6   :  { %703 = vmatpush3.msra.mxu0 %v416_v50 }
  0xe7   :  { %704 = vmatprep.subr.mxu0 %v788_v0 }
  0xe8   :  { %705 = vmatpush3.msra.mxu0 %v415_v51 }
  0xe9   :  { %706 = vmatprep.subr.mxu0 %v788_v0 }
  0xea   :  { %707 = vmatpush3.msra.mxu0 %v414_v52 }
  0xeb   :  { %708 = vmatprep.subr.mxu0 %v788_v0 }
  0xec   :  { %709 = vmatpush3.msra.mxu0 %v413_v53 }
  0xed   :  { %710 = vmatprep.subr.mxu0 %v788_v0 }
  0xee   :  { %711 = vmatpush3.msra.mxu0 %v412_v54 }
  0xef   :  { %712 = vmatprep.subr.mxu0 %v788_v0 }
  0xf0   :  { %713 = vmatpush3.msra.mxu0 %v411_v55 }
  0xf1   :  { %714 = vmatprep.subr.mxu0 %v788_v0 }
  0xf2   :  { %715 = vmatpush3.msra.mxu0 %v410_v56 }
  0xf3   :  { %716 = vmatprep.subr.mxu0 %v788_v0 }
  0xf4   :  { %717 = vmatpush3.msra.mxu0 %v409_v57 }
  0xf5   :  { %718 = vmatprep.subr.mxu0 %v788_v0 }
  0xf6   :  { %719 = vmatpush3.msra.mxu0 %v408_v58 }
  0xf7   :  { %720 = vmatprep.subr.mxu0 %v788_v0 }
  0xf8   :  { %721 = vmatpush3.msra.mxu0 %v407_v1 }
  0xf9   :  { %722 = vmatprep.subr.mxu0 %v788_v0 }
  0xfa   :  { %723 = vmatpush3.msra.mxu0 %v406_v2 }
  0xfb   :  { %724 = vmatprep.subr.mxu0 %v788_v0 }
  0xfc   :  { %725 = vmatpush3.msra.mxu0 %v405_v3 }
 0x19d   :  { %v306_v60 = vpop.f32.mrf.mxu0 }
 0x19e   :  { %v307_v61 = vadd.f32 %v553_v59, %v306_v60 }
 0x19f   :  { %v658_v62 = vpop.f32.mrf.mxu0 }
 0x1a0   :  { %v310_v63 = vmax.f32 %v307_v61, 0.0 }
 0x1a2   :  { %692 = vmatmul.mubr.f32.vlgmr.msra.gmra.mxu1 %v310_v63 }
 0x262   :  { %v400_v5 = vpop.f32.mrf.mxu1 }
 0x263   :  { %v401_v7 = vadd.f32 %v554_v4, %v400_v5 }
 0x264   :  { %v693_v8 = vpop.f32.mrf.mxu1 }
 0x265   :  { %v404_v9 = vmax.f32 %v401_v7, 0.0 }
 0x267   :  { %727 = vmatmul.mubr.f32.vlgmr.msra.gmra.mxu0 %v404_v9 }
 0x327   :  { %v494_v11 = vpop.f32.mrf.mxu0 }
 0x328   :  { %v495_v0 = vadd.f32 %v555_v10, %v494_v11 }
 0x329   :  { %v728_v12 = vpop.f32.mrf.mxu0 }
 0x32a   :  { %737 = vtanh.f32 %v495_v0 }
 0x337   :  { %v738_v13 = vpop.eup %737 }
 0x338   :  { %522 = vrot.lane.b32.xlu0 %v738_v13, %s790_s9  ;;  %v499_v14 = vmul.f32 1.442695, %v738_v13  ;;  %v518_v16 = vsel %vm60_vm1, %v738_v13, 0.0 }
 0x33a   :  { %739 = vpow2.f32 %v499_v14 }
 0x347   :  { %v740_v15 = vpop.eup %739 }
 0x348   :  { %502 = vrot.lane.b32.xlu1 %v740_v15, %s790_s9 }
 0x34c   :  { %511 = vrot.lane.b32.xlu1 %v740_v15, %s787_s25 }
 0x357   :  { %519 = vadd.xlane.f32.xlu0 %v518_v16 }
 0x3aa   :  { %v523_v17 = vpop.permute.xlu0 %522 }
 0x3ab   :  { %v525_v18 = vsel %vm60_vm1, %v523_v17, 0.0 }
 0x3ac   :  { %526 = vadd.xlane.f32.xlu1 %v525_v18 }
 0x3ba   :  { %v503_v19 = vpop.permute.xlu1 %502 }
 0x3bb   :  { %v505_v25 = vmul.f32 %v503_v19, %v890_v6 }
 0x3bd   :  { %507 = vrot.lane.b32.xlu1 %v495_v0, %s791_s8 }
 0x3be   :  { %v512_v20 = vpop.permute.xlu1 %511 }
 0x3bf   :  { %v514_v23 = vmul.f32 %v512_v20, %v890_v6 }
 0x3c1   :  { %v515_v27 = vadd.f32 %v514_v23, %v495_v0 }
 0x3e0   :  { %v520_v21 = vpop.xlane.xlu0 %519 }
 0x435   :  { %v527_v22 = vpop.xlane.xlu1 %526 }
 0x436   :  { %v528_v24 = vadd.f32 %v527_v22, %v520_v21 }
 0x438   :  { %530 = vst.msk [vmem:[%s1076_s12] sm:$0xff] %vm529_vm3, %v528_v24 }
 0x439   :  { %v508_v26 = vpop.permute.xlu1 %507 }
 0x43a   :  { %v510_v28 = vadd.f32 %v508_v26, %v505_v25 }
 0x43c   :  { %v516_v29 = vsel %vm60_vm1, %v510_v28, %v515_v27 }
 0x43d   :  { %517 = vst.msk [vmem:[#allocation5] sm:$0xff] %vm134_vm2, %v516_v29 }
 0x43e   :  { %772 = shalt.err (!%p769_p9)
}
 0x43f   :  { %540 = dma.vmem_to_hbm [thread:$0]  %s538_s19, 128, %s1075_s11, [#allocation4]  }
 0x440   :  { %783 = dma.done.wait [#allocation4], 128  }
 0x441   :  { %784 = vsyncadd [#allocation4], 4294967168 }
 0x442   :  { %548 = vsyncpa [#allocation3], 1 }
 0x443   :  { %549 = vsyncpa [#allocation4], 1 }

</bundles_post_ra>
